<compile_context>
chip_gen: v6e
topology: v6e:2x2x1
jax: 0.10.0
libtpu: 0.0.40
codegen_flags: <defaults>
</compile_context>

<pallas_src>
import jax
import jax.numpy as jnp
from jax.experimental import pallas as pl
from jax.experimental.pallas import tpu as pltpu


def _round_up(n, m):
    return ((n + m - 1) // m) * m


def _adapter_slt_kernel(x_ref, w_ref, b_ref, out_ref):
    """One (TN, H) token tile: out = x + gelu(x @ W + b)."""
    x = x_ref[...]                                      # (TN, H), input dtype
    # Tensorized linear (materialized dense weight): bf16 MXU operands,
    # f32 accumulation.
    h = jnp.dot(x.astype(jnp.bfloat16), w_ref[...],
                preferred_element_type=jnp.float32)     # (TN, H) f32
    h = h + b_ref[...]                                  # bias in f32
    # Exact erf GELU (transformers ACT2FN["gelu"]), f32 math.
    act = 0.5 * h * (1.0 + jax.lax.erf(h * 0.7071067811865476))
    out_ref[...] = (x.astype(jnp.float32) + act).astype(out_ref.dtype)


def deberta_adapter_slt(hidden_states, params, *, block_tokens=1024):
    """hidden_states: (..., H). Returns the same shape / dtype."""
    orig_shape = hidden_states.shape
    H = orig_shape[-1]
    x2 = hidden_states.reshape(-1, H)
    N = x2.shape[0]

    # Token tile: multiple of 8 sublanes; when N is large enough, cap it so
    # the grid has at least 2 steps (keeps both v7x TensorCores busy).
    block_tokens = max(8, _round_up(block_tokens, 8))
    if N >= 16:
        tn = min(block_tokens, _round_up(pl.cdiv(N, 2), 8))
    else:
        tn = N                                         # single full block
    grid = (pl.cdiv(N, tn),)                           # edge block masked by Pallas

    w = params["w"]                                    # (H, H) bf16 == PyTorch W.T
    b = params["b"]                                    # (1, H) f32

    itemsize = jnp.dtype(hidden_states.dtype).itemsize
    cost = pl.CostEstimate(
        flops=2 * N * H * H,
        bytes_accessed=2 * N * H * itemsize + H * H * 2 + H * 4,
        transcendentals=N * H,
    )

    def build(single_buffer_resident):
        resident_kw = {}
        if single_buffer_resident:
            resident_kw = dict(pipeline_mode=pl.Buffered(1))
        return pl.pallas_call(
            _adapter_slt_kernel,
            out_shape=jax.ShapeDtypeStruct((N, H), hidden_states.dtype),
            grid=grid,
            in_specs=[
                pl.BlockSpec((tn, H), lambda i: (i, 0)),                  # activations: pipelined
                pl.BlockSpec((H, H), lambda i: (0, 0), **resident_kw),    # weight: VMEM-resident
                pl.BlockSpec((1, H), lambda i: (0, 0), **resident_kw),    # bias:   VMEM-resident
            ],
            out_specs=pl.BlockSpec((tn, H), lambda i: (i, 0)),
            compiler_params=pltpu.CompilerParams(
                dimension_semantics=("parallel",),
                vmem_limit_bytes=32 * 1024 * 1024,
            ),
            cost_estimate=cost,
        )

    try:
        out2 = build(True)(x2, w, b)
    except Exception:
        # Fallback if this JAX build rejects pipeline_mode=pl.Buffered(1).
        out2 = build(False)(x2, w, b)
    return out2.reshape(orig_shape)


def init_params(key, in_modes, out_modes, tensor_rank, *, core_std=0.3):
    """Tensor-train parameterization of the tensorized Linear(H -> H).

    TT-matrix cores G_k of shape (r_{k-1}, m_k, n_k, r_k) are contracted into
    a dense (prod(in_modes), prod(out_modes)) weight here, at parameter-prep
    time; the kernel then performs the equivalent dense matmul.  The weight
    is stored in bf16 (MXU operand dtype) and the bias pre-reshaped to (1, H)
    f32 so no per-forward cast / reshape pass is needed.
    """
    assert len(in_modes) == len(out_modes)
    n_cores = len(in_modes)
    ranks = (1,) + (tensor_rank,) * (n_cores - 1) + (1,)
    keys = jax.random.split(key, n_cores + 1)
    cores = [
        core_std * jax.random.normal(
            keys[k], (ranks[k], in_modes[k], out_modes[k], ranks[k + 1]),
            dtype=jnp.float32)
        for k in range(n_cores)
    ]
    # Contract the TT-matrix cores into a dense (H_in, H_out) weight.
    w = cores[0][0]                                    # (m0, n0, r1)
    m, n = in_modes[0], out_modes[0]
    for core in cores[1:]:
        w = jnp.einsum("MNr,rmns->MmNns", w, core)
        m *= core.shape[1]
        n *= core.shape[2]
        w = w.reshape(m, n, core.shape[3])
    w = w[:, :, 0]                                     # (H_in, H_out)
    h_out = w.shape[1]
    b = 0.05 * jax.random.normal(keys[n_cores], (h_out,), dtype=jnp.float32)
    return {"w": w.astype(jnp.bfloat16),
            "b": b.reshape(1, h_out).astype(jnp.float32)}


if __name__ == "__main__":
    # Small demo shapes: batch=2, seq=8, hidden=32 (= 4*4*2 tensor modes),
    # mirroring the real config's hidden=768 (= 12*8*8 / 8*8*12) at reduced
    # scale.
    B, S = 2, 8
    in_modes, out_modes = (4, 4, 2), (2, 4, 4)
    H = 1
    for m in in_modes:
        H *= m
    tensor_rank = 4

    key = jax.random.PRNGKey(0)
    k_x, k_p = jax.random.split(key)
    hidden_states = jax.random.normal(k_x, (B, S, H), jnp.float32)
    params = init_params(k_p, in_modes, out_modes, tensor_rank)

    out = deberta_adapter_slt(hidden_states, params)
    out = jax.block_until_ready(out)

    # Pure-f32 reference of the module semantics (using the bf16-rounded
    # weight the kernel sees).  The kernel feeds the MXU bf16 activations, so
    # compare with a widened tolerance.
    w_f32 = params["w"].astype(jnp.float32)
    b_f32 = params["b"].astype(jnp.float32)

    def ref(x):
        h = x @ w_f32 + b_f32
        return x + 0.5 * h * (1.0 + jax.lax.erf(h * 0.7071067811865476))

    expected = ref(hidden_states.reshape(-1, H)).reshape(B, S, H)
    max_err = float(jnp.max(jnp.abs(out - expected)))
    assert jnp.allclose(out, expected, atol=2e-2, rtol=2e-2), max_err

    print("KERNEL_OK")
</pallas_src>

<mosaic_0001>
module attributes {stable_mosaic.version = 11 : i64} {
  func.func @_adapter_slt_kernel(%arg0: i32, %arg1: memref<8x32xf32, #tpu.memory_space<vmem>>, %arg2: memref<32x32xbf16, #tpu.memory_space<vmem>>, %arg3: memref<1x32xf32, #tpu.memory_space<vmem>>, %arg4: memref<8x32xf32, #tpu.memory_space<vmem>>) attributes {dimension_semantics = [#tpu.dimension_semantics<parallel>], iteration_bounds = array<i64: 2>, scalar_prefetch = 0 : i64, scratch_operands = 0 : i64, tpu.core_type = #tpu.core_type<tc>, window_params = [{transform_indices = @transform_0, window_bounds = array<i64: 8, 32>}, {pipeline_mode = #tpu.pipeline_mode<synchronous>, transform_indices = @transform_1, window_bounds = array<i64: 32, 32>}, {pipeline_mode = #tpu.pipeline_mode<synchronous>, transform_indices = @transform_2, window_bounds = array<i64: 1, 32>}, {transform_indices = @transform_3, window_bounds = array<i64: 8, 32>}]} {
    %c0 = arith.constant 0 : index
    %c0_0 = arith.constant 0 : index
    %0 = vector.load %arg1[%c0, %c0_0] : memref<8x32xf32, #tpu.memory_space<vmem>>, vector<8x32xf32>
    %1 = arith.truncf %0 : vector<8x32xf32> to vector<8x32xbf16>
    %c0_1 = arith.constant 0 : index
    %c0_2 = arith.constant 0 : index
    %2 = vector.load %arg2[%c0_1, %c0_2] : memref<32x32xbf16, #tpu.memory_space<vmem>>, vector<32x32xbf16>
    %cst = arith.constant dense<0.000000e+00> : vector<8x32xf32>
    %3 = tpu.matmul %1, %2, %cst {dimension_numbers = #tpu.dot_dimension_numbers<[1], [0], [0], [1], [0, 0, 1, 1], [], []>} : vector<8x32xbf16>, vector<32x32xbf16>, vector<8x32xf32> -> vector<8x32xf32>
    %c0_3 = arith.constant 0 : index
    %c0_4 = arith.constant 0 : index
    %4 = vector.load %arg3[%c0_3, %c0_4] : memref<1x32xf32, #tpu.memory_space<vmem>>, vector<1x32xf32>
    %5 = vector.broadcast %4 : vector<1x32xf32> to vector<8x32xf32>
    %6 = arith.addf %3, %5 : vector<8x32xf32>
    %cst_5 = arith.constant 5.000000e-01 : f32
    %7 = vector.broadcast %cst_5 : f32 to vector<8x32xf32>
    %8 = arith.mulf %7, %6 : vector<8x32xf32>
    %cst_6 = arith.constant 0.707106769 : f32
    %9 = vector.broadcast %cst_6 : f32 to vector<8x32xf32>
    %10 = arith.mulf %6, %9 : vector<8x32xf32>
    %11 = math.erf %10 : vector<8x32xf32>
    %cst_7 = arith.constant 1.000000e+00 : f32
    %12 = vector.broadcast %cst_7 : f32 to vector<8x32xf32>
    %13 = arith.addf %12, %11 : vector<8x32xf32>
    %14 = arith.mulf %8, %13 : vector<8x32xf32>
    %15 = arith.addf %0, %14 : vector<8x32xf32>
    %c0_8 = arith.constant 0 : index
    %c0_9 = arith.constant 0 : index
    %16 = vector.load %arg4[%c0_8, %c0_9] : memref<8x32xf32, #tpu.memory_space<vmem>>, vector<8x32xf32>
    tpu.vector_store %arg4[%c0_8, %c0_9], %15 {strides = array<i32>} : memref<8x32xf32, #tpu.memory_space<vmem>>, vector<8x32xf32>,
    return
  }
  func.func @transform_0(%arg0: i32) -> (i32, i32) {
    %c0_i32 = arith.constant 0 : i32
    %c0_i32_0 = arith.constant 0 : i32
    return %arg0, %c0_i32 : i32, i32
  }
  func.func @transform_1(%arg0: i32) -> (i32, i32) {
    %c0_i32 = arith.constant 0 : i32
    %c0_i32_0 = arith.constant 0 : i32
    %c0_i32_1 = arith.constant 0 : i32
    return %c0_i32, %c0_i32_0 : i32, i32
  }
  func.func @transform_2(%arg0: i32) -> (i32, i32) {
    %c0_i32 = arith.constant 0 : i32
    %c0_i32_0 = arith.constant 0 : i32
    %c0_i32_1 = arith.constant 0 : i32
    return %c0_i32, %c0_i32_0 : i32, i32
  }
  func.func @transform_3(%arg0: i32) -> (i32, i32) {
    %c0_i32 = arith.constant 0 : i32
    %c0_i32_0 = arith.constant 0 : i32
    return %arg0, %c0_i32 : i32, i32
  }
}

module attributes {stable_mosaic.version = 11 : i64} {
  func.func @_adapter_slt_kernel(%arg0: i32, %arg1: memref<8x32xf32, #tpu.memory_space<vmem>>, %arg2: memref<32x32xbf16, #tpu.memory_space<vmem>>, %arg3: memref<1x32xf32, #tpu.memory_space<vmem>>, %arg4: memref<8x32xf32, #tpu.memory_space<vmem>>) attributes {dimension_semantics = [#tpu.dimension_semantics<parallel>], iteration_bounds = array<i64: 2>, scalar_prefetch = 0 : i64, scratch_operands = 0 : i64, tpu.core_type = #tpu.core_type<tc>, window_params = [{transform_indices = @transform_0, window_bounds = array<i64: 8, 32>}, {pipeline_mode = #tpu.pipeline_mode<synchronous>, transform_indices = @transform_1, window_bounds = array<i64: 32, 32>}, {pipeline_mode = #tpu.pipeline_mode<synchronous>, transform_indices = @transform_2, window_bounds = array<i64: 1, 32>}, {transform_indices = @transform_3, window_bounds = array<i64: 8, 32>}]} {
    %c0 = arith.constant 0 : index
    %c0_0 = arith.constant 0 : index
    %0 = vector.load %arg1[%c0, %c0_0] : memref<8x32xf32, #tpu.memory_space<vmem>>, vector<8x32xf32>
    %1 = arith.truncf %0 : vector<8x32xf32> to vector<8x32xbf16>
    %c0_1 = arith.constant 0 : index
    %c0_2 = arith.constant 0 : index
    %2 = vector.load %arg2[%c0_1, %c0_2] : memref<32x32xbf16, #tpu.memory_space<vmem>>, vector<32x32xbf16>
    %cst = arith.constant dense<0.000000e+00> : vector<8x32xf32>
    %3 = tpu.matmul %1, %2, %cst {dimension_numbers = #tpu.dot_dimension_numbers<[1], [0], [0], [1], [0, 0, 1, 1], [], []>} : vector<8x32xbf16>, vector<32x32xbf16>, vector<8x32xf32> -> vector<8x32xf32>
    %c0_3 = arith.constant 0 : index
    %c0_4 = arith.constant 0 : index
    %4 = vector.load %arg3[%c0_3, %c0_4] : memref<1x32xf32, #tpu.memory_space<vmem>>, vector<1x32xf32>
    %5 = vector.broadcast %4 : vector<1x32xf32> to vector<8x32xf32>
    %6 = arith.addf %3, %5 : vector<8x32xf32>
    %cst_5 = arith.constant 5.000000e-01 : f32
    %7 = vector.broadcast %cst_5 : f32 to vector<8x32xf32>
    %8 = arith.mulf %7, %6 : vector<8x32xf32>
    %cst_6 = arith.constant 0.707106769 : f32
    %9 = vector.broadcast %cst_6 : f32 to vector<8x32xf32>
    %10 = arith.mulf %6, %9 : vector<8x32xf32>
    %11 = math.erf %10 : vector<8x32xf32>
    %cst_7 = arith.constant 1.000000e+00 : f32
    %12 = vector.broadcast %cst_7 : f32 to vector<8x32xf32>
    %13 = arith.addf %12, %11 : vector<8x32xf32>
    %14 = arith.mulf %8, %13 : vector<8x32xf32>
    %15 = arith.addf %0, %14 : vector<8x32xf32>
    %c0_8 = arith.constant 0 : index
    %c0_9 = arith.constant 0 : index
    %16 = vector.load %arg4[%c0_8, %c0_9] : memref<8x32xf32, #tpu.memory_space<vmem>>, vector<8x32xf32>
    tpu.vector_store %arg4[%c0_8, %c0_9], %15 {strides = array<i32>} : memref<8x32xf32, #tpu.memory_space<vmem>>, vector<8x32xf32>,
    return
  }
  func.func @transform_0(%arg0: i32) -> (i32, i32) {
    %c0_i32 = arith.constant 0 : i32
    %c0_i32_0 = arith.constant 0 : i32
    return %arg0, %c0_i32 : i32, i32
  }
  func.func @transform_1(%arg0: i32) -> (i32, i32) {
    %c0_i32 = arith.constant 0 : i32
    %c0_i32_0 = arith.constant 0 : i32
    %c0_i32_1 = arith.constant 0 : i32
    return %c0_i32, %c0_i32_0 : i32, i32
  }
  func.func @transform_2(%arg0: i32) -> (i32, i32) {
    %c0_i32 = arith.constant 0 : i32
    %c0_i32_0 = arith.constant 0 : i32
    %c0_i32_1 = arith.constant 0 : i32
    return %c0_i32, %c0_i32_0 : i32, i32
  }
  func.func @transform_3(%arg0: i32) -> (i32, i32) {
    %c0_i32 = arith.constant 0 : i32
    %c0_i32_0 = arith.constant 0 : i32
    return %arg0, %c0_i32 : i32, i32
  }
}

</mosaic_0001>

<bundles_post_ra>
// kernel: tpu_custom_call.1
= control target key start
LH: loop header
LB: loop body
LE: loop exit
PB: predicated region body
PF: predicated region fallthrough
CT: control target
= control target key end

     0   :  { %8 = vsyncpa [#allocation3], 0  ;;  %s780_s0 = inlined_call_operand.hbm [shape: f32[16,32], index: 0, kind: input, shape index: {}]   ;;  %s781_s1 = inlined_call_operand.hbm [shape: bf16[32,32], index: 1, kind: input, shape index: {}]   ;;  %s782_s2 = inlined_call_operand.vmem [shape: f32[1,32], index: 2, kind: input, shape index: {}]   ;;  %s783_s3 = inlined_call_operand.hbm [shape: f32[16,32], index: 3, kind: output, shape index: {}]  }
   0x1   :  { %10 = vsyncpa [#allocation3 + $0x1], 0 }
   0x2   :  { %11 = vsyncpa [#allocation6], 0 }
   0x3   :  { %12 = vsyncpa [#allocation4], 0 }
   0x4   :  { %14 = vsyncpa [#allocation4 + $0x1], 0  ;;  %s617_s12 = smov 0   ;;  %s619_s13 = smov 0  }
   0x5   :  { %s621_s14 = smov 0   ;;  %s623_s15 = smov 0  }
   0x6 LB: > { %s638_s16 = sadd.s32 4294967295, %s588_s15   ;;  %s372_s17 = sadd.s32 4294967294, %s588_s15   ;;  %s588_s15 = sphi %s623_s15, %s805_s15   ;;  %s584_s14 = sphi %s621_s14, %s804_s14   ;;  %s580_s13 = sphi %s619_s13, %s803_s13   ;;  %s576_s12 = sphi %s617_s12, %s802_s12  }
   0x7   : > { %p40_p0 = scmp.ne.s32.totalorder %s580_s13, %s576_s12  ;;  %p784_p1 = scmp.eq.s32.totalorder %s638_s16, 0 }
   0x8   : > { %p112_p3 = scmp.eq.s32.totalorder %s372_s17, 1  ;;  %p373_p5 = scmp.ge.s32.totalorder %s588_s15, 1 }
   0x9   : > { %p647_p4 = por %p784_p1, %p40_p0  ;;  %p119_p7 = scmp.lt.s32.totalorder %s588_s15, 3 }
   0xa   : > { %p652_p6 = por %p112_p3, %p40_p0  ;;  %s590_s21 = smov [#allocation5]  }
   0xb   : > { %s788_s18 = scalar_select %p647_p4, 1, 0 }
   0xc   : > { %s789_s19 = scalar_select %p652_p6, 1, 0 }
   0xd   : > { %p657_p8 = pnand %p373_p5, %p119_p7  ;;  %s131_s22 = sshll.u32 %s590_s21, 4  ;;  %s132_s22 = int_to_ptr.vmem [resolvable:$true] %s131_s22 }
   0xe   : > { %s671_s24 = sadd.s32 1, %s588_s15   ;;  %s27_s25 = sadd.s32 1, %s584_s14 }
   0xf   : > { %s790_s20 = scalar_select %p657_p8, 1, 0 }
  0x10   : > { %p409_p9 = pneg %p657_p8  ;;  %s24_s26 = ssub.s32 %s588_s15, %s671_s24 }
  0x11   : > { %s477_s27 = scalar_lea.vmem %s132_s22, 256  ;;  %p485_p5 = scmp.lt.s32.totalorder %s132_s22, %s132_s22 }
  0x12   : > { %p666_p11 = pnand %p409_p9, %p784_p1  ;;  %p478_p13 = scmp.ne.s32.totalorder %s132_s22, %s477_s27 }
  0x13   : > { %p486_p7 = scmp.lt.s32.totalorder %s477_s27, %s477_s27 }
  0x14   : > { %p468_p12 = pneg %p666_p11 }
  0x15   : > { %p487_p10 = por %p486_p7, %p485_p5 }
  0x16   : > { %p480_p0 = pnand %p478_p13, %p468_p12 }
  0x18   : > { %p481_p3 = pneg %p480_p0 }
  0x1a   : > { %p488_p2 = pnand %p487_p10, %p481_p3 }
  0x1c   : > { %491 = shalt.err (!%p488_p2)
}
  0x1d   : > { %s591_s28 = smov 64   ;;  %s592_s29 = smov 4  }
  0x1e   : > { %412 = dma.hbm_to_vmem [thread:$0]  (!%p666_p11), %s781_s1, 256, %s132_s22, [#allocation6], %s591_s28, %s591_s28, %s592_s29  }
  0x1f   : > { %p25_p9 = scmp.eq.s32.totalorder %s24_s26, 0  ;;  %p34_p12 = scmp.ne.s32.totalorder %s584_s14, %s580_s13 }
  0x20   : > { %p35_p10 = scmp.eq.s32.totalorder %s588_s15, 0  ;;  %p422_p2 = scmp.lt.s32.totalorder %s588_s15, 2 }
  0x21   : > { %s688_s5 = scalar_select %p25_p9, %s584_s14, %s27_s25  }
  0x22   : > { %p36_p13 = por %p35_p10, %p34_p12  ;;  %p792_p0 = scmp.eq.s32.totalorder %s638_s16, 1 }
  0x23   : > { %s148_s7 = sand.u32 1, %s584_s14   ;;  %s377_s8 = sshll.u32 %s588_s15, 7 }
  0x24   : > { %p692_p3 = por %p792_p0, %p34_p12  ;;  %s376_s9 = sshll.u32 %s148_s7, 3 }
  0x25   : > { %s701_s17 = scalar_lea.hbm %s780_s0, %s377_s8  ;;  %s152_s21 = scalar_lea.vmem [#allocation2], %s376_s9 }
  0x26   : > { %s793_s6 = scalar_select %p692_p3, 1, 0 }
  0x27   : > { %s159_s22 = sshll.u32 %s152_s21, 4  ;;  %p703_p11 = pnand %p422_p2, %p36_p13  ;;  %s160_s22 = int_to_ptr.vmem [resolvable:$true] %s159_s22 }
  0x28   : > { %s149_s25 = scalar_lea.sflag [#allocation3], %s148_s7  ;;  %s492_s26 = scalar_lea.hbm %s701_s17, 128 }
  0x29   : > { %p493_p5 = scmp.ne.s32.totalorder %s701_s17, %s492_s26  ;;  %p494_p7 = pneg %p703_p11 }
  0x2a   : > { %s497_s29 = scalar_lea.hbm %s780_s0, 256  ;;  %p498_p10 = scmp.lt.s32.totalorder %s701_s17, %s780_s0 }
  0x2b   : > { %p495_p9 = pnand %p494_p7, %p493_p5  ;;  %p499_p2 = scmp.lt.s32.totalorder %s497_s29, %s492_s26 }
  0x2d   : > { %p496_p12 = pneg %p495_p9  ;;  %p500_p13 = por %p499_p2, %p498_p10 }
  0x2f   : > { %p501_p0 = pnand %p500_p13, %p496_p12 }
  0x31   : > { %504 = shalt.err (!%p501_p0)
}
  0x32   : > { %s505_s8 = scalar_lea.vmem %s160_s22, 128  ;;  %s593_s7 = smov [#allocation2]  }
  0x33   : > { %p506_p1 = scmp.ne.s32.totalorder %s160_s22, %s505_s8  ;;  %s510_s9 = sshll.u32 %s593_s7, 4  ;;  %s511_s9 = int_to_ptr.vmem [resolvable:$false] %s510_s9 }
  0x34   : > { %s512_s10 = scalar_lea.vmem %s511_s9, 256  ;;  %p513_p5 = scmp.lt.s32.totalorder %s160_s22, %s511_s9 }
  0x35   : > { %p508_p6 = pnand %p506_p1, %p494_p7  ;;  %p514_p9 = scmp.lt.s32.totalorder %s512_s10, %s505_s8 }
  0x37   : > { %p509_p3 = pneg %p508_p6  ;;  %p515_p4 = por %p514_p9, %p513_p5 }
  0x39   : > { %p516_p8 = pnand %p515_p4, %p509_p3 }
  0x3b   : > { %519 = shalt.err (!%p516_p8)
}
  0x3c   : > { %416 = dma.hbm_to_vmem [thread:$0]  (!%p703_p11), %s701_s17, 128, %s160_s22, %s149_s25  }
  0x3d   : > { %p795_p12 = scmp.ne.s32.totalorder %s790_s20, 0 }
  0x3e   : > { %s724_s11 = sand.u32 (!%p795_p12), 1, %s580_s13   ;;  %p796_p1 = scmp.ne.s32.totalorder (!%p795_p12), %s788_s18, 0 }
  0x3f   : > { %168 = sbr.rel (%p795_p12) target bundleno = 311 (0x137), region = 32  ;;  %s379_s21 = sshll.u32 (!%p795_p12), %s724_s11, 3 }
  0x40   : > { %s171_s26 = scalar_lea.sflag (!%p795_p12), [#allocation3], %s724_s11  ;;  %s174_s27 = scalar_lea.vmem (!%p795_p12), [#allocation2], %s379_s21 }
  0x44   : > { %563 = dma.done.wait (%p796_p1), %s171_s26, 128  }
  0x45   : > { %565 = vsyncadd (%p796_p1), %s171_s26, 4294967168  ;;  %p797_p4 = scmp.eq.s32.totalorder %s638_s16, 0 }
  0x47   : > { %567 = dma.done.wait (%p797_p4), [#allocation6], 256   ;;  %p798_p6 = pmov %p797_p4 }
  0x48   : > { %v594_v0 = vmov 0.0   ;;  %vm595_vm0 = vmmov 0   ;;  %v462_v1 = vld [vmem:[#allocation5 + $0x8] sm:$0xff]   ;;  %v463_v2 = vld [vmem:[#allocation5] sm:$0xff]   ;;  %v202_v3 = vld [vmem:[%s174_s27] sm:$0xff]  ;;  %vm227_vm1 = vcmask 261120  }
  0x49   : > { %569 = vsyncadd (%p798_p6), [#allocation6], 4294967040  ;;  %393 = vmatprep.subr.bf16.mxu0 %v594_v0  ;;  %397 = vmatprep.mubr.msk.bf16.mxu0 %vm595_vm0, %v594_v0  ;;  %v203_v4 = vpack.c.bf16 %v202_v3, %v202_v3  ;;  %v382_v5 = vld [vmem:[%s782_s2] ss:$0 sm:$0xff]  ;;  %s387_s17 = sshll.u32 %s638_s16, 7  ;;  %s200_s22 = scalar_lea.vmem [#allocation7], %s379_s21 }
  0x4a   : > { %394 = vmatpush3.bf16.msra.mxu0 %v462_v1  ;;  %s292_s23 = sshll.u32 %s200_s22, 4  ;;  %s290_s29 = scalar_lea.hbm %s783_s3, %s387_s17  ;;  %s293_s23 = int_to_ptr.vmem [resolvable:$true] %s292_s23 }
  0x4b   : > { %395 = vmatprep.subr.bf16.mxu0 %v594_v0  ;;  %s279_s30 = scalar_lea.sflag [#allocation4], %s724_s11  ;;  %s520_s4 = scalar_lea.vmem %s293_s23, 128 }
  0x4c   : > { %p521_p8 = scmp.ne.s32.totalorder %s293_s23, %s520_s4  ;;  %p799_p3 = scmp.ne.s32.totalorder %s793_s6, 0 }
  0x4d   : > { %s596_s8 = smov [#allocation7]  }
  0x4e   : > { %396 = vmatpush3.bf16.msra.mxu0 %v463_v2  ;;  %p522_p11 = pnand %p521_p8, %p799_p3  ;;  %s524_s16 = sshll.u32 %s596_s8, 4  ;;  %s525_s16 = int_to_ptr.vmem [resolvable:$false] %s524_s16 }
  0x4f   : > { %s526_s7 = scalar_lea.vmem %s525_s16, 256  ;;  %p527_p10 = scmp.lt.s32.totalorder %s293_s23, %s525_s16 }
  0x50   : > { %p523_p7 = pneg %p522_p11  ;;  %p528_p2 = scmp.lt.s32.totalorder %s526_s7, %s520_s4 }
  0x51   : > { %398 = vmatmul.mubr.msk.bf16.vlgmr.msra.gmra.mxu0 %vm227_vm1, %v203_v4 }
  0x52   : > { %p529_p13 = por %p528_p2, %p527_p10 }
  0x54   : > { %p530_p0 = pnand %p529_p13, %p523_p7 }
 0x111   : > { %v265_v6 = vpop.f32.mrf.mxu0 }
 0x112   : > { %v266_v7 = vadd.f32 %v382_v5, %v265_v6 }
 0x113   : > { %v399_v8 = vpop.f32.mrf.mxu0 }
 0x114   : > { %v272_v9 = vmul.f32 0.70710677, %v266_v7  ;;  %v271_v13 = vmul.f32 0.5, %v266_v7 }
 0x115   : > { %v268_v10 = vpop.f32.mrf.mxu0 }
 0x116   : > { %464 = verf.f32 %v272_v9 }
 0x117   : > { %v400_v11 = vpop.f32.mrf.mxu0 }
 0x123   : > { %v465_v12 = vpop.eup %464 }
 0x124   : > { %v274_v14 = vadd.f32 1.0, %v465_v12 }
 0x126   : > { %v275_v15 = vmul.f32 %v274_v14, %v271_v13 }
 0x128   : > { %v276_v16 = vadd.f32 %v275_v15, %v202_v3 }
 0x12a   : > { %277 = vst.msk [vmem:[%s200_s22] sm:$0xff] %vm227_vm1, %v276_v16 }
 0x12b   : > { %533 = shalt.err (!%p530_p0)
}
 0x12c   : > { %s534_s9 = scalar_lea.hbm %s290_s29, 128  ;;  %s538_s21 = scalar_lea.hbm %s783_s3, 256 }
 0x12d   : > { %p535_p5 = scmp.ne.s32.totalorder %s290_s29, %s534_s9  ;;  %p539_p1 = scmp.lt.s32.totalorder %s290_s29, %s783_s3 }
 0x12e   : > { %p540_p4 = scmp.lt.s32.totalorder %s538_s21, %s534_s9 }
 0x12f   : > { %p536_p9 = pnand %p535_p5, %p799_p3 }
 0x130   : > { %p541_p6 = por %p540_p4, %p539_p1 }
 0x131   : > { %p537_p12 = pneg %p536_p9 }
 0x133   : > { %p542_p8 = pnand %p541_p6, %p537_p12 }
 0x135   : > { %545 = shalt.err (!%p542_p8)
}
 0x136   : > { %407 = dma.vmem_to_hbm [thread:$0]  (%p799_p3), %s293_s23, 128, %s290_s29, %s279_s30  }
 0x137 PF: > { %s304_s18 = sand.u32 1, %s576_s12   ;;  %p800_p11 = scmp.ne.s32.totalorder %s789_s19, 0 }
 0x138   : > { %p801_p7 = scmp.ge.s32.totalorder %s588_s15, 2  ;;  %s305_s20 = scalar_lea.sflag [#allocation4], %s304_s18 }
 0x13a   : > { %p418_p10 = pnand %p801_p7, %p800_p11 }
 0x13c   : > { %p419_p2 = pneg %p418_p10 }
 0x13e   : > { %571 = dma.done.wait (%p419_p2), %s305_s20, 128  }
 0x13f   : > { %573 = vsyncadd (%p419_p2), %s305_s20, 4294967168  ;;  %p17_p13 = scmp.ge.s32.totalorder %s671_s24, 4   ;;  %s802_s12 = smov %s580_s13 }
 0x140   : > { %s803_s13 = smov %s584_s14  ;;  %s804_s14 = smov %s688_s5 }
 0x141   : > { %s805_s15 = smov %s671_s24  ;;  %19 = sbr.rel (!%p17_p13) target bundleno = 6 (0x6), region = 81 }
 0x146   :  { %310 = vsyncpa [#allocation3], 1 }
 0x147   :  { %312 = vsyncpa [#allocation3 + $0x1], 1 }
 0x148   :  { %313 = vsyncpa [#allocation6], 1 }
 0x149   :  { %314 = vsyncpa [#allocation4], 1 }
 0x14a   :  { %316 = vsyncpa [#allocation4 + $0x1], 1 }

// kernel: tpu_custom_call.1
= control target key start
LH: loop header
LB: loop body
LE: loop exit
PB: predicated region body
PF: predicated region fallthrough
CT: control target
= control target key end

     0   :  { %8 = vsyncpa [#allocation3], 0  ;;  %s780_s0 = inlined_call_operand.hbm [shape: f32[16,32], index: 0, kind: input, shape index: {}]   ;;  %s781_s1 = inlined_call_operand.hbm [shape: bf16[32,32], index: 1, kind: input, shape index: {}]   ;;  %s782_s2 = inlined_call_operand.vmem [shape: f32[1,32], index: 2, kind: input, shape index: {}]   ;;  %s783_s3 = inlined_call_operand.hbm [shape: f32[16,32], index: 3, kind: output, shape index: {}]  }
   0x1   :  { %10 = vsyncpa [#allocation3 + $0x1], 0 }
   0x2   :  { %11 = vsyncpa [#allocation6], 0 }
   0x3   :  { %12 = vsyncpa [#allocation4], 0 }
   0x4   :  { %14 = vsyncpa [#allocation4 + $0x1], 0  ;;  %s617_s12 = smov 0   ;;  %s619_s13 = smov 0  }
   0x5   :  { %s621_s14 = smov 0   ;;  %s623_s15 = smov 0  }
   0x6 LB: > { %s638_s16 = sadd.s32 4294967295, %s588_s15   ;;  %s372_s17 = sadd.s32 4294967294, %s588_s15   ;;  %s588_s15 = sphi %s623_s15, %s805_s15   ;;  %s584_s14 = sphi %s621_s14, %s804_s14   ;;  %s580_s13 = sphi %s619_s13, %s803_s13   ;;  %s576_s12 = sphi %s617_s12, %s802_s12  }
   0x7   : > { %p40_p0 = scmp.ne.s32.totalorder %s580_s13, %s576_s12  ;;  %p784_p1 = scmp.eq.s32.totalorder %s638_s16, 0 }
   0x8   : > { %p112_p3 = scmp.eq.s32.totalorder %s372_s17, 1  ;;  %p373_p5 = scmp.ge.s32.totalorder %s588_s15, 1 }
   0x9   : > { %p647_p4 = por %p784_p1, %p40_p0  ;;  %p119_p7 = scmp.lt.s32.totalorder %s588_s15, 3 }
   0xa   : > { %p652_p6 = por %p112_p3, %p40_p0  ;;  %s590_s21 = smov [#allocation5]  }
   0xb   : > { %s788_s18 = scalar_select %p647_p4, 1, 0 }
   0xc   : > { %s789_s19 = scalar_select %p652_p6, 1, 0 }
   0xd   : > { %p657_p8 = pnand %p373_p5, %p119_p7  ;;  %s131_s22 = sshll.u32 %s590_s21, 4  ;;  %s132_s22 = int_to_ptr.vmem [resolvable:$true] %s131_s22 }
   0xe   : > { %s671_s24 = sadd.s32 1, %s588_s15   ;;  %s27_s25 = sadd.s32 1, %s584_s14 }
   0xf   : > { %s790_s20 = scalar_select %p657_p8, 1, 0 }
  0x10   : > { %p409_p9 = pneg %p657_p8  ;;  %s24_s26 = ssub.s32 %s588_s15, %s671_s24 }
  0x11   : > { %s477_s27 = scalar_lea.vmem %s132_s22, 256  ;;  %p485_p5 = scmp.lt.s32.totalorder %s132_s22, %s132_s22 }
  0x12   : > { %p666_p11 = pnand %p409_p9, %p784_p1  ;;  %p478_p13 = scmp.ne.s32.totalorder %s132_s22, %s477_s27 }
  0x13   : > { %p486_p7 = scmp.lt.s32.totalorder %s477_s27, %s477_s27 }
  0x14   : > { %p468_p12 = pneg %p666_p11 }
  0x15   : > { %p487_p10 = por %p486_p7, %p485_p5 }
  0x16   : > { %p480_p0 = pnand %p478_p13, %p468_p12 }
  0x18   : > { %p481_p3 = pneg %p480_p0 }
  0x1a   : > { %p488_p2 = pnand %p487_p10, %p481_p3 }
  0x1c   : > { %491 = shalt.err (!%p488_p2)
}
  0x1d   : > { %s591_s28 = smov 64   ;;  %s592_s29 = smov 4  }
  0x1e   : > { %412 = dma.hbm_to_vmem [thread:$0]  (!%p666_p11), %s781_s1, 256, %s132_s22, [#allocation6], %s591_s28, %s591_s28, %s592_s29  }
  0x1f   : > { %p25_p9 = scmp.eq.s32.totalorder %s24_s26, 0  ;;  %p34_p12 = scmp.ne.s32.totalorder %s584_s14, %s580_s13 }
  0x20   : > { %p35_p10 = scmp.eq.s32.totalorder %s588_s15, 0  ;;  %p422_p2 = scmp.lt.s32.totalorder %s588_s15, 2 }
  0x21   : > { %s688_s5 = scalar_select %p25_p9, %s584_s14, %s27_s25  }
  0x22   : > { %p36_p13 = por %p35_p10, %p34_p12  ;;  %p792_p0 = scmp.eq.s32.totalorder %s638_s16, 1 }
  0x23   : > { %s148_s7 = sand.u32 1, %s584_s14   ;;  %s377_s8 = sshll.u32 %s588_s15, 7 }
  0x24   : > { %p692_p3 = por %p792_p0, %p34_p12  ;;  %s376_s9 = sshll.u32 %s148_s7, 3 }
  0x25   : > { %s701_s17 = scalar_lea.hbm %s780_s0, %s377_s8  ;;  %s152_s21 = scalar_lea.vmem [#allocation2], %s376_s9 }
  0x26   : > { %s793_s6 = scalar_select %p692_p3, 1, 0 }
  0x27   : > { %s159_s22 = sshll.u32 %s152_s21, 4  ;;  %p703_p11 = pnand %p422_p2, %p36_p13  ;;  %s160_s22 = int_to_ptr.vmem [resolvable:$true] %s159_s22 }
  0x28   : > { %s149_s25 = scalar_lea.sflag [#allocation3], %s148_s7  ;;  %s492_s26 = scalar_lea.hbm %s701_s17, 128 }
  0x29   : > { %p493_p5 = scmp.ne.s32.totalorder %s701_s17, %s492_s26  ;;  %p494_p7 = pneg %p703_p11 }
  0x2a   : > { %s497_s29 = scalar_lea.hbm %s780_s0, 256  ;;  %p498_p10 = scmp.lt.s32.totalorder %s701_s17, %s780_s0 }
  0x2b   : > { %p495_p9 = pnand %p494_p7, %p493_p5  ;;  %p499_p2 = scmp.lt.s32.totalorder %s497_s29, %s492_s26 }
  0x2d   : > { %p496_p12 = pneg %p495_p9  ;;  %p500_p13 = por %p499_p2, %p498_p10 }
  0x2f   : > { %p501_p0 = pnand %p500_p13, %p496_p12 }
  0x31   : > { %504 = shalt.err (!%p501_p0)
}
  0x32   : > { %s505_s8 = scalar_lea.vmem %s160_s22, 128  ;;  %s593_s7 = smov [#allocation2]  }
  0x33   : > { %p506_p1 = scmp.ne.s32.totalorder %s160_s22, %s505_s8  ;;  %s510_s9 = sshll.u32 %s593_s7, 4  ;;  %s511_s9 = int_to_ptr.vmem [resolvable:$false] %s510_s9 }
  0x34   : > { %s512_s10 = scalar_lea.vmem %s511_s9, 256  ;;  %p513_p5 = scmp.lt.s32.totalorder %s160_s22, %s511_s9 }
  0x35   : > { %p508_p6 = pnand %p506_p1, %p494_p7  ;;  %p514_p9 = scmp.lt.s32.totalorder %s512_s10, %s505_s8 }
  0x37   : > { %p509_p3 = pneg %p508_p6  ;;  %p515_p4 = por %p514_p9, %p513_p5 }
  0x39   : > { %p516_p8 = pnand %p515_p4, %p509_p3 }
  0x3b   : > { %519 = shalt.err (!%p516_p8)
}
  0x3c   : > { %416 = dma.hbm_to_vmem [thread:$0]  (!%p703_p11), %s701_s17, 128, %s160_s22, %s149_s25  }
  0x3d   : > { %p795_p12 = scmp.ne.s32.totalorder %s790_s20, 0 }
  0x3e   : > { %s724_s11 = sand.u32 (!%p795_p12), 1, %s580_s13   ;;  %p796_p1 = scmp.ne.s32.totalorder (!%p795_p12), %s788_s18, 0 }
  0x3f   : > { %168 = sbr.rel (%p795_p12) target bundleno = 311 (0x137), region = 32  ;;  %s379_s21 = sshll.u32 (!%p795_p12), %s724_s11, 3 }
  0x40   : > { %s171_s26 = scalar_lea.sflag (!%p795_p12), [#allocation3], %s724_s11  ;;  %s174_s27 = scalar_lea.vmem (!%p795_p12), [#allocation2], %s379_s21 }
  0x44   : > { %563 = dma.done.wait (%p796_p1), %s171_s26, 128  }
  0x45   : > { %565 = vsyncadd (%p796_p1), %s171_s26, 4294967168  ;;  %p797_p4 = scmp.eq.s32.totalorder %s638_s16, 0 }
  0x47   : > { %567 = dma.done.wait (%p797_p4), [#allocation6], 256   ;;  %p798_p6 = pmov %p797_p4 }
  0x48   : > { %v594_v0 = vmov 0.0   ;;  %vm595_vm0 = vmmov 0   ;;  %v462_v1 = vld [vmem:[#allocation5 + $0x8] sm:$0xff]   ;;  %v463_v2 = vld [vmem:[#allocation5] sm:$0xff]   ;;  %v202_v3 = vld [vmem:[%s174_s27] sm:$0xff]  ;;  %vm227_vm1 = vcmask 261120  }
  0x49   : > { %569 = vsyncadd (%p798_p6), [#allocation6], 4294967040  ;;  %393 = vmatprep.subr.bf16.mxu0 %v594_v0  ;;  %397 = vmatprep.mubr.msk.bf16.mxu0 %vm595_vm0, %v594_v0  ;;  %v203_v4 = vpack.c.bf16 %v202_v3, %v202_v3  ;;  %v382_v5 = vld [vmem:[%s782_s2] ss:$0 sm:$0xff]  ;;  %s387_s17 = sshll.u32 %s638_s16, 7  ;;  %s200_s22 = scalar_lea.vmem [#allocation7], %s379_s21 }
  0x4a   : > { %394 = vmatpush3.bf16.msra.mxu0 %v462_v1  ;;  %s292_s23 = sshll.u32 %s200_s22, 4  ;;  %s290_s29 = scalar_lea.hbm %s783_s3, %s387_s17  ;;  %s293_s23 = int_to_ptr.vmem [resolvable:$true] %s292_s23 }
  0x4b   : > { %395 = vmatprep.subr.bf16.mxu0 %v594_v0  ;;  %s279_s30 = scalar_lea.sflag [#allocation4], %s724_s11  ;;  %s520_s4 = scalar_lea.vmem %s293_s23, 128 }
  0x4c   : > { %p521_p8 = scmp.ne.s32.totalorder %s293_s23, %s520_s4  ;;  %p799_p3 = scmp.ne.s32.totalorder %s793_s6, 0 }
  0x4d   : > { %s596_s8 = smov [#allocation7]  }
  0x4e   : > { %396 = vmatpush3.bf16.msra.mxu0 %v463_v2  ;;  %p522_p11 = pnand %p521_p8, %p799_p3  ;;  %s524_s16 = sshll.u32 %s596_s8, 4  ;;  %s525_s16 = int_to_ptr.vmem [resolvable:$false] %s524_s16 }
  0x4f   : > { %s526_s7 = scalar_lea.vmem %s525_s16, 256  ;;  %p527_p10 = scmp.lt.s32.totalorder %s293_s23, %s525_s16 }
  0x50   : > { %p523_p7 = pneg %p522_p11  ;;  %p528_p2 = scmp.lt.s32.totalorder %s526_s7, %s520_s4 }
  0x51   : > { %398 = vmatmul.mubr.msk.bf16.vlgmr.msra.gmra.mxu0 %vm227_vm1, %v203_v4 }
  0x52   : > { %p529_p13 = por %p528_p2, %p527_p10 }
  0x54   : > { %p530_p0 = pnand %p529_p13, %p523_p7 }
 0x111   : > { %v265_v6 = vpop.f32.mrf.mxu0 }
 0x112   : > { %v266_v7 = vadd.f32 %v382_v5, %v265_v6 }
 0x113   : > { %v399_v8 = vpop.f32.mrf.mxu0 }
 0x114   : > { %v272_v9 = vmul.f32 0.70710677, %v266_v7  ;;  %v271_v13 = vmul.f32 0.5, %v266_v7 }
 0x115   : > { %v268_v10 = vpop.f32.mrf.mxu0 }
 0x116   : > { %464 = verf.f32 %v272_v9 }
 0x117   : > { %v400_v11 = vpop.f32.mrf.mxu0 }
 0x123   : > { %v465_v12 = vpop.eup %464 }
 0x124   : > { %v274_v14 = vadd.f32 1.0, %v465_v12 }
 0x126   : > { %v275_v15 = vmul.f32 %v274_v14, %v271_v13 }
 0x128   : > { %v276_v16 = vadd.f32 %v275_v15, %v202_v3 }
 0x12a   : > { %277 = vst.msk [vmem:[%s200_s22] sm:$0xff] %vm227_vm1, %v276_v16 }
 0x12b   : > { %533 = shalt.err (!%p530_p0)
}
 0x12c   : > { %s534_s9 = scalar_lea.hbm %s290_s29, 128  ;;  %s538_s21 = scalar_lea.hbm %s783_s3, 256 }
 0x12d   : > { %p535_p5 = scmp.ne.s32.totalorder %s290_s29, %s534_s9  ;;  %p539_p1 = scmp.lt.s32.totalorder %s290_s29, %s783_s3 }
 0x12e   : > { %p540_p4 = scmp.lt.s32.totalorder %s538_s21, %s534_s9 }
 0x12f   : > { %p536_p9 = pnand %p535_p5, %p799_p3 }
 0x130   : > { %p541_p6 = por %p540_p4, %p539_p1 }
 0x131   : > { %p537_p12 = pneg %p536_p9 }
 0x133   : > { %p542_p8 = pnand %p541_p6, %p537_p12 }
 0x135   : > { %545 = shalt.err (!%p542_p8)
}
 0x136   : > { %407 = dma.vmem_to_hbm [thread:$0]  (%p799_p3), %s293_s23, 128, %s290_s29, %s279_s30  }
 0x137 PF: > { %s304_s18 = sand.u32 1, %s576_s12   ;;  %p800_p11 = scmp.ne.s32.totalorder %s789_s19, 0 }
 0x138   : > { %p801_p7 = scmp.ge.s32.totalorder %s588_s15, 2  ;;  %s305_s20 = scalar_lea.sflag [#allocation4], %s304_s18 }
 0x13a   : > { %p418_p10 = pnand %p801_p7, %p800_p11 }
 0x13c   : > { %p419_p2 = pneg %p418_p10 }
 0x13e   : > { %571 = dma.done.wait (%p419_p2), %s305_s20, 128  }
 0x13f   : > { %573 = vsyncadd (%p419_p2), %s305_s20, 4294967168  ;;  %p17_p13 = scmp.ge.s32.totalorder %s671_s24, 4   ;;  %s802_s12 = smov %s580_s13 }
 0x140   : > { %s803_s13 = smov %s584_s14  ;;  %s804_s14 = smov %s688_s5 }
 0x141   : > { %s805_s15 = smov %s671_s24  ;;  %19 = sbr.rel (!%p17_p13) target bundleno = 6 (0x6), region = 81 }
 0x146   :  { %310 = vsyncpa [#allocation3], 1 }
 0x147   :  { %312 = vsyncpa [#allocation3 + $0x1], 1 }
 0x148   :  { %313 = vsyncpa [#allocation6], 1 }
 0x149   :  { %314 = vsyncpa [#allocation4], 1 }
 0x14a   :  { %316 = vsyncpa [#allocation4 + $0x1], 1 }

</bundles_post_ra>
